<compile_context>
chip_gen: v7x
topology: tpu7x:2x2x1
jax: 0.10.0
libtpu: 0.0.40
codegen_flags: <defaults>
</compile_context>

<pallas_src>
import math
import functools

import jax
import jax.numpy as jnp
from jax.experimental import pallas as pl
from jax.experimental.pallas import tpu as pltpu


def mha_kernel(q_ref, k_ref, v_ref, mask_ref,
               wq_ref, wk_ref, wv_ref, wo_ref,
               o_ref, *, d_key: int):
    """One (batch, q_tile, head) grid step.

    q_ref    : (1, tq, D) bf16   query activations (q-tile)
    k_ref    : (1, Sk, D) bf16   key activations (full KV length)
    v_ref    : (1, Sk, D) bf16   value activations
    mask_ref : (tq, Sk)   f32    additive mask (0 or -1e30)
    wq/wk/wv : (1, D, dk) bf16   this head's projection weights (x @ W^T layout)
    wo_ref   : (1, dk, D) bf16   this head's rows of Wo^T
    o_ref    : (1, tq, D) f32    output block, accumulated over the head axis
    """
    h = pl.program_id(2)
    scale = 1.0 / math.sqrt(d_key)

    xq = q_ref[0]
    xk = k_ref[0]
    xv = v_ref[0]
    wq = wq_ref[0]
    wk = wk_ref[0]
    wv = wv_ref[0]
    wo = wo_ref[0]

    # Per-head projections on the MXU (bf16 in, f32 accumulate); scale folded
    # into Q once instead of scaling the (tq, Sk) score matrix.
    qh = jnp.dot(xq, wq, preferred_element_type=jnp.float32) * scale     # (tq, dk)
    kh = jnp.dot(xk, wk, preferred_element_type=jnp.float32)             # (Sk, dk)
    vh = jnp.dot(xv, wv, preferred_element_type=jnp.float32)             # (Sk, dk)

    # Scores + hoisted additive mask, numerically-stable softmax.
    s = jnp.einsum("qd,kd->qk",
                   qh.astype(jnp.bfloat16), kh.astype(jnp.bfloat16),
                   preferred_element_type=jnp.float32)                   # (tq, Sk)
    s = s + mask_ref[...]
    s = s - jnp.max(s, axis=-1, keepdims=True)
    p = jnp.exp(s)
    p = p * pl.reciprocal(jnp.sum(p, axis=-1, keepdims=True), approx=True)

    # Context for this head, projected straight through this head's rows of
    # Wo^T and accumulated into the resident output block (no concatenate).
    ctx = jnp.dot(p.astype(jnp.bfloat16), vh.astype(jnp.bfloat16),
                  preferred_element_type=jnp.float32)                    # (tq, dk)
    contrib = jnp.dot(ctx.astype(jnp.bfloat16), wo,
                      preferred_element_type=jnp.float32)                # (tq, D)

    @pl.when(h == 0)
    def _():
        o_ref[...] = jnp.zeros_like(o_ref)

    o_ref[0] += contrib.astype(o_ref.dtype)


def multi_head_attention(queries, keys, values, mask, params, *, heads: int,
                         q_block=None):
    """queries/keys/values: (B, S, D) f32; mask: (Sq, Sk) (mask==0 -> masked) or None.

    params hold weights in x @ W^T layout:
      wqt/wkt/wvt : (D, D) with column block h = AttentionHead h's Wq/Wk/Wv^T
      wot         : (D, D) = Wo^T (row block h = head h's context dims)
    """
    B, Sq, D = queries.shape
    Bk, Sk, Dk_in = keys.shape
    assert keys.shape == values.shape and Bk == B and Dk_in == D
    assert D % heads == 0, "d_model must be divisible by heads"
    d_key = D // heads

    if q_block is None:
        q_block = Sq if Sq <= 256 else 256         # lane/sublane friendly tile
    assert Sq % q_block == 0
    n_q = Sq // q_block

    bf = lambda a: a.astype(jnp.bfloat16)

    # Pre-split per-head weights (head axis leading) so each grid step streams
    # only the weights of the head it is working on.
    wq_h = bf(params["wqt"]).reshape(D, heads, d_key).transpose(1, 0, 2)   # (H, D, dk)
    wk_h = bf(params["wkt"]).reshape(D, heads, d_key).transpose(1, 0, 2)
    wv_h = bf(params["wvt"]).reshape(D, heads, d_key).transpose(1, 0, 2)
    wo_h = bf(params["wot"]).reshape(heads, d_key, D)                      # (H, dk, D)

    # Finite additive mask computed once (hoisted out of all per-head work);
    # -1e30 keeps fully-masked rows NaN-free (PyTorch's -inf would yield NaN).
    if mask is None:
        addmask = jnp.zeros((Sq, Sk), jnp.float32)
    else:
        addmask = jnp.where(mask == 0, jnp.float32(-1e30), jnp.float32(0.0))

    kernel = functools.partial(mha_kernel, d_key=d_key)

    return pl.pallas_call(
        kernel,
        out_shape=jax.ShapeDtypeStruct((B, Sq, D), jnp.float32),
        grid_spec=pltpu.PrefetchScalarGridSpec(
            num_scalar_prefetch=0,
            grid=(B, n_q, heads),                  # head axis = reduction (last)
            in_specs=[
                pl.BlockSpec((1, q_block, D), lambda b, qi, h: (b, qi, 0)),  # queries
                pl.BlockSpec((1, Sk, D),      lambda b, qi, h: (b, 0, 0)),   # keys
                pl.BlockSpec((1, Sk, D),      lambda b, qi, h: (b, 0, 0)),   # values
                pl.BlockSpec((q_block, Sk),   lambda b, qi, h: (qi, 0)),     # addmask
                pl.BlockSpec((1, D, d_key),   lambda b, qi, h: (h, 0, 0)),   # Wq head h
                pl.BlockSpec((1, D, d_key),   lambda b, qi, h: (h, 0, 0)),   # Wk head h
                pl.BlockSpec((1, D, d_key),   lambda b, qi, h: (h, 0, 0)),   # Wv head h
                pl.BlockSpec((1, d_key, D),   lambda b, qi, h: (h, 0, 0)),   # Wo rows h
            ],
            out_specs=pl.BlockSpec((1, q_block, D), lambda b, qi, h: (b, qi, 0)),
        ),
        compiler_params=pltpu.CompilerParams(
            dimension_semantics=("parallel", "parallel", "arbitrary")),
    )(bf(queries), bf(keys), bf(values), addmask, wq_h, wk_h, wv_h, wo_h)


# ------------------------- pure-JAX reference (for checking) -----------------
def mha_reference(queries, keys, values, mask, params, *, heads: int):
    """Mirrors the kernel's bf16-input / f32-accumulate math."""
    f32 = jnp.float32
    c = lambda a: a.astype(jnp.bfloat16)
    B, Sq, D = queries.shape
    Sk = keys.shape[1]
    dk = D // heads
    scale = 1.0 / math.sqrt(dk)

    q = jnp.einsum("bsd,de->bse", c(queries), c(params["wqt"]),
                   preferred_element_type=f32) * scale
    k = jnp.einsum("bsd,de->bse", c(keys), c(params["wkt"]),
                   preferred_element_type=f32)
    v = jnp.einsum("bsd,de->bse", c(values), c(params["wvt"]),
                   preferred_element_type=f32)

    qh = q.reshape(B, Sq, heads, dk)
    kh = k.reshape(B, Sk, heads, dk)
    vh = v.reshape(B, Sk, heads, dk)

    s = jnp.einsum("bqhd,bkhd->bhqk", c(qh), c(kh), preferred_element_type=f32)
    if mask is not None:
        s = s + jnp.where(mask == 0, -1e30, 0.0).astype(f32)[None, None]
    p = jax.nn.softmax(s, axis=-1)

    ctx = jnp.einsum("bhqk,bkhd->bqhd", c(p), c(vh), preferred_element_type=f32)
    out = jnp.einsum("bqd,de->bqe", c(ctx.reshape(B, Sq, D)), c(params["wot"]),
                     preferred_element_type=f32)
    return out


def init_params(key, d_model):
    """Weights in x @ W^T layout (PyTorch Linear weights, pre-transposed)."""
    ks = jax.random.split(key, 4)
    s = 0.02
    shp = (d_model, d_model)
    return dict(
        wqt=jax.random.normal(ks[0], shp, jnp.float32) * s,
        wkt=jax.random.normal(ks[1], shp, jnp.float32) * s,
        wvt=jax.random.normal(ks[2], shp, jnp.float32) * s,
        wot=jax.random.normal(ks[3], shp, jnp.float32) * s,
    )


if __name__ == "__main__":
    B, S, D, HEADS = 2, 8, 32, 4

    key = jax.random.PRNGKey(0)
    kq, kk, kv, kp = jax.random.split(key, 4)
    queries = jax.random.normal(kq, (B, S, D), jnp.float32)
    keys = jax.random.normal(kk, (B, S, D), jnp.float32)
    values = jax.random.normal(kv, (B, S, D), jnp.float32)
    mask = jnp.tril(jnp.ones((S, S), jnp.int32))   # causal: mask==0 positions masked

    params = init_params(kp, D)

    out = multi_head_attention(queries, keys, values, mask, params, heads=HEADS)
    out = jax.block_until_ready(out)

    ref = mha_reference(queries, keys, values, mask, params, heads=HEADS)
    assert out.shape == (B, S, D)
    assert jnp.allclose(out, ref, atol=2e-3, rtol=2e-2), "mismatch vs reference"

    print("KERNEL_OK")
</pallas_src>

<mosaic_0001>
module attributes {stable_mosaic.version = 11 : i64} {
  func.func @mha_kernel(%arg0: i32, %arg1: i32, %arg2: i32, %arg3: memref<1x8x32xbf16, #tpu.memory_space<vmem>>, %arg4: memref<1x8x32xbf16, #tpu.memory_space<vmem>>, %arg5: memref<1x8x32xbf16, #tpu.memory_space<vmem>>, %arg6: memref<8x8xf32, #tpu.memory_space<vmem>>, %arg7: memref<1x32x8xbf16, #tpu.memory_space<vmem>>, %arg8: memref<1x32x8xbf16, #tpu.memory_space<vmem>>, %arg9: memref<1x32x8xbf16, #tpu.memory_space<vmem>>, %arg10: memref<1x8x32xbf16, #tpu.memory_space<vmem>>, %arg11: memref<1x8x32xf32, #tpu.memory_space<vmem>>) attributes {dimension_semantics = [#tpu.dimension_semantics<parallel>, #tpu.dimension_semantics<parallel>, #tpu.dimension_semantics<arbitrary>], iteration_bounds = array<i64: 2, 1, 4>, scalar_prefetch = 0 : i64, scratch_operands = 0 : i64, tpu.core_type = #tpu.core_type<tc>, window_params = [{transform_indices = @transform_0, window_bounds = array<i64: 1, 8, 32>}, {transform_indices = @transform_1, window_bounds = array<i64: 1, 8, 32>}, {transform_indices = @transform_2, window_bounds = array<i64: 1, 8, 32>}, {transform_indices = @transform_3, window_bounds = array<i64: 8, 8>}, {transform_indices = @transform_4, window_bounds = array<i64: 1, 32, 8>}, {transform_indices = @transform_5, window_bounds = array<i64: 1, 32, 8>}, {transform_indices = @transform_6, window_bounds = array<i64: 1, 32, 8>}, {transform_indices = @transform_7, window_bounds = array<i64: 1, 8, 32>}, {transform_indices = @transform_8, window_bounds = array<i64: 1, 8, 32>}]} {
    %c0 = arith.constant 0 : index
    %c0_0 = arith.constant 0 : index
    %c0_1 = arith.constant 0 : index
    %0 = vector.load %arg3[%c0, %c0_0, %c0_1] : memref<1x8x32xbf16, #tpu.memory_space<vmem>>, vector<1x8x32xbf16>
    %1 = vector.shape_cast %0 : vector<1x8x32xbf16> to vector<8x32xbf16>
    %c0_2 = arith.constant 0 : index
    %c0_3 = arith.constant 0 : index
    %c0_4 = arith.constant 0 : index
    %2 = vector.load %arg4[%c0_2, %c0_3, %c0_4] : memref<1x8x32xbf16, #tpu.memory_space<vmem>>, vector<1x8x32xbf16>
    %3 = vector.shape_cast %2 : vector<1x8x32xbf16> to vector<8x32xbf16>
    %c0_5 = arith.constant 0 : index
    %c0_6 = arith.constant 0 : index
    %c0_7 = arith.constant 0 : index
    %4 = vector.load %arg5[%c0_5, %c0_6, %c0_7] : memref<1x8x32xbf16, #tpu.memory_space<vmem>>, vector<1x8x32xbf16>
    %5 = vector.shape_cast %4 : vector<1x8x32xbf16> to vector<8x32xbf16>
    %c0_8 = arith.constant 0 : index
    %c0_9 = arith.constant 0 : index
    %c0_10 = arith.constant 0 : index
    %6 = vector.load %arg7[%c0_8, %c0_9, %c0_10] : memref<1x32x8xbf16, #tpu.memory_space<vmem>>, vector<1x32x8xbf16>
    %7 = vector.shape_cast %6 : vector<1x32x8xbf16> to vector<32x8xbf16>
    %c0_11 = arith.constant 0 : index
    %c0_12 = arith.constant 0 : index
    %c0_13 = arith.constant 0 : index
    %8 = vector.load %arg8[%c0_11, %c0_12, %c0_13] : memref<1x32x8xbf16, #tpu.memory_space<vmem>>, vector<1x32x8xbf16>
    %9 = vector.shape_cast %8 : vector<1x32x8xbf16> to vector<32x8xbf16>
    %c0_14 = arith.constant 0 : index
    %c0_15 = arith.constant 0 : index
    %c0_16 = arith.constant 0 : index
    %10 = vector.load %arg9[%c0_14, %c0_15, %c0_16] : memref<1x32x8xbf16, #tpu.memory_space<vmem>>, vector<1x32x8xbf16>
    %11 = vector.shape_cast %10 : vector<1x32x8xbf16> to vector<32x8xbf16>
    %c0_17 = arith.constant 0 : index
    %c0_18 = arith.constant 0 : index
    %c0_19 = arith.constant 0 : index
    %12 = vector.load %arg10[%c0_17, %c0_18, %c0_19] : memref<1x8x32xbf16, #tpu.memory_space<vmem>>, vector<1x8x32xbf16>
    %13 = vector.shape_cast %12 : vector<1x8x32xbf16> to vector<8x32xbf16>
    %cst = arith.constant dense<0.000000e+00> : vector<8x8xf32>
    %14 = tpu.matmul %1, %7, %cst {dimension_numbers = #tpu.dot_dimension_numbers<[1], [0], [0], [1], [0, 0, 1, 1], [], []>} : vector<8x32xbf16>, vector<32x8xbf16>, vector<8x8xf32> -> vector<8x8xf32>
    %cst_20 = arith.constant 0.353553385 : f32
    %15 = vector.broadcast %cst_20 : f32 to vector<8x8xf32>
    %16 = arith.mulf %14, %15 : vector<8x8xf32>
    %cst_21 = arith.constant dense<0.000000e+00> : vector<8x8xf32>
    %17 = tpu.matmul %3, %9, %cst_21 {dimension_numbers = #tpu.dot_dimension_numbers<[1], [0], [0], [1], [0, 0, 1, 1], [], []>} : vector<8x32xbf16>, vector<32x8xbf16>, vector<8x8xf32> -> vector<8x8xf32>
    %cst_22 = arith.constant dense<0.000000e+00> : vector<8x8xf32>
    %18 = tpu.matmul %5, %11, %cst_22 {dimension_numbers = #tpu.dot_dimension_numbers<[1], [0], [0], [1], [0, 0, 1, 1], [], []>} : vector<8x32xbf16>, vector<32x8xbf16>, vector<8x8xf32> -> vector<8x8xf32>
    %19 = arith.truncf %16 : vector<8x8xf32> to vector<8x8xbf16>
    %20 = arith.truncf %17 : vector<8x8xf32> to vector<8x8xbf16>
    "tpu.trace_start"() <{level = 10 : i32, message = "qd,kd->qk"}> : () -> ()
    %cst_23 = arith.constant dense<0.000000e+00> : vector<8x8xf32>
    %21 = tpu.matmul %19, %20, %cst_23 {dimension_numbers = #tpu.dot_dimension_numbers<[1], [1], [0], [0], [0, 0, 1, 0], [], []>} : vector<8x8xbf16>, vector<8x8xbf16>, vector<8x8xf32> -> vector<8x8xf32>
    "tpu.trace_stop"() : () -> ()
    %c0_24 = arith.constant 0 : index
    %c0_25 = arith.constant 0 : index
    %22 = vector.load %arg6[%c0_24, %c0_25] : memref<8x8xf32, #tpu.memory_space<vmem>>, vector<8x8xf32>
    %23 = arith.addf %21, %22 : vector<8x8xf32>
    %cst_26 = arith.constant dense<0xFF800000> : vector<8xf32>
    %24 = vector.multi_reduction <maximumf>, %23, %cst_26 [1] : vector<8x8xf32> to vector<8xf32>
    %25 = vector.shape_cast %24 : vector<8xf32> to vector<8x1xf32>
    %26 = vector.broadcast %25 : vector<8x1xf32> to vector<8x8xf32>
    %27 = arith.subf %23, %26 : vector<8x8xf32>
    %28 = math.exp %27 : vector<8x8xf32>
    %cst_27 = arith.constant dense<0.000000e+00> : vector<8xf32>
    %29 = vector.multi_reduction <add>, %28, %cst_27 [1] : vector<8x8xf32> to vector<8xf32>
    %30 = vector.shape_cast %29 : vector<8xf32> to vector<8x1xf32>
    %31 = tpu.reciprocal %30 {approx = true} : vector<8x1xf32> -> vector<8x1xf32>
    %32 = vector.broadcast %31 : vector<8x1xf32> to vector<8x8xf32>
    %33 = arith.mulf %28, %32 : vector<8x8xf32>
    %34 = arith.truncf %33 : vector<8x8xf32> to vector<8x8xbf16>
    %35 = arith.truncf %18 : vector<8x8xf32> to vector<8x8xbf16>
    %cst_28 = arith.constant dense<0.000000e+00> : vector<8x8xf32>
    %36 = tpu.matmul %34, %35, %cst_28 {dimension_numbers = #tpu.dot_dimension_numbers<[1], [0], [0], [1], [0, 0, 1, 1], [], []>} : vector<8x8xbf16>, vector<8x8xbf16>, vector<8x8xf32> -> vector<8x8xf32>
    %37 = arith.truncf %36 : vector<8x8xf32> to vector<8x8xbf16>
    %cst_29 = arith.constant dense<0.000000e+00> : vector<8x32xf32>
    %38 = tpu.matmul %37, %13, %cst_29 {dimension_numbers = #tpu.dot_dimension_numbers<[1], [0], [0], [1], [0, 0, 1, 1], [], []>} : vector<8x8xbf16>, vector<8x32xbf16>, vector<8x32xf32> -> vector<8x32xf32>
    %c0_i32 = arith.constant 0 : i32
    %39 = arith.cmpi eq, %arg2, %c0_i32 : i32
    %40 = arith.extui %39 : i1 to i32
    %c0_i32_30 = arith.constant 0 : i32
    %41 = arith.cmpi ne, %40, %c0_i32_30 : i32
    scf.if %41 {
      %cst_37 = arith.constant 0.000000e+00 : f32
      %48 = vector.broadcast %cst_37 : f32 to vector<1x8x32xf32>
      %c0_38 = arith.constant 0 : index
      %c0_39 = arith.constant 0 : index
      %c0_40 = arith.constant 0 : index
      %49 = vector.load %arg11[%c0_38, %c0_39, %c0_40] : memref<1x8x32xf32, #tpu.memory_space<vmem>>, vector<1x8x32xf32>
      tpu.vector_store %arg11[%c0_38, %c0_39, %c0_40], %48 {strides = array<i32>} : memref<1x8x32xf32, #tpu.memory_space<vmem>>, vector<1x8x32xf32>,
    } else {
    }
    %c0_31 = arith.constant 0 : index
    %c0_32 = arith.constant 0 : index
    %c0_33 = arith.constant 0 : index
    %42 = vector.load %arg11[%c0_31, %c0_32, %c0_33] : memref<1x8x32xf32, #tpu.memory_space<vmem>>, vector<1x8x32xf32>
    %43 = vector.shape_cast %42 : vector<1x8x32xf32> to vector<8x32xf32>
    %44 = arith.addf %43, %38 : vector<8x32xf32>
    %c0_34 = arith.constant 0 : index
    %c0_35 = arith.constant 0 : index
    %c0_36 = arith.constant 0 : index
    %45 = vector.load %arg11[%c0_34, %c0_35, %c0_36] : memref<1x8x32xf32, #tpu.memory_space<vmem>>, vector<1x8x32xf32>
    %46 = vector.shape_cast %45 : vector<1x8x32xf32> to vector<8x32xf32>
    %47 = vector.shape_cast %44 : vector<8x32xf32> to vector<1x8x32xf32>
    tpu.vector_store %arg11[%c0_34, %c0_35, %c0_36], %47 {strides = array<i32>} : memref<1x8x32xf32, #tpu.memory_space<vmem>>, vector<1x8x32xf32>,
    return
  }
  func.func @transform_0(%arg0: i32, %arg1: i32, %arg2: i32) -> (i32, i32, i32) {
    %c0_i32 = arith.constant 0 : i32
    %c0_i32_0 = arith.constant 0 : i32
    return %arg0, %arg1, %c0_i32 : i32, i32, i32
  }
  func.func @transform_1(%arg0: i32, %arg1: i32, %arg2: i32) -> (i32, i32, i32) {
    %c0_i32 = arith.constant 0 : i32
    %c0_i32_0 = arith.constant 0 : i32
    %c0_i32_1 = arith.constant 0 : i32
    return %arg0, %c0_i32, %c0_i32_0 : i32, i32, i32
  }
  func.func @transform_2(%arg0: i32, %arg1: i32, %arg2: i32) -> (i32, i32, i32) {
    %c0_i32 = arith.constant 0 : i32
    %c0_i32_0 = arith.constant 0 : i32
    %c0_i32_1 = arith.constant 0 : i32
    return %arg0, %c0_i32, %c0_i32_0 : i32, i32, i32
  }
  func.func @transform_3(%arg0: i32, %arg1: i32, %arg2: i32) -> (i32, i32) {
    %c0_i32 = arith.constant 0 : i32
    %c0_i32_0 = arith.constant 0 : i32
    return %arg1, %c0_i32 : i32, i32
  }
  func.func @transform_4(%arg0: i32, %arg1: i32, %arg2: i32) -> (i32, i32, i32) {
    %c0_i32 = arith.constant 0 : i32
    %c0_i32_0 = arith.constant 0 : i32
    %c0_i32_1 = arith.constant 0 : i32
    return %arg2, %c0_i32, %c0_i32_0 : i32, i32, i32
  }
  func.func @transform_5(%arg0: i32, %arg1: i32, %arg2: i32) -> (i32, i32, i32) {
    %c0_i32 = arith.constant 0 : i32
    %c0_i32_0 = arith.constant 0 : i32
    %c0_i32_1 = arith.constant 0 : i32
    return %arg2, %c0_i32, %c0_i32_0 : i32, i32, i32
  }
  func.func @transform_6(%arg0: i32, %arg1: i32, %arg2: i32) -> (i32, i32, i32) {
    %c0_i32 = arith.constant 0 : i32
    %c0_i32_0 = arith.constant 0 : i32
    %c0_i32_1 = arith.constant 0 : i32
    return %arg2, %c0_i32, %c0_i32_0 : i32, i32, i32
  }
  func.func @transform_7(%arg0: i32, %arg1: i32, %arg2: i32) -> (i32, i32, i32) {
    %c0_i32 = arith.constant 0 : i32
    %c0_i32_0 = arith.constant 0 : i32
    %c0_i32_1 = arith.constant 0 : i32
    return %arg2, %c0_i32, %c0_i32_0 : i32, i32, i32
  }
  func.func @transform_8(%arg0: i32, %arg1: i32, %arg2: i32) -> (i32, i32, i32) {
    %c0_i32 = arith.constant 0 : i32
    %c0_i32_0 = arith.constant 0 : i32
    return %arg0, %arg1, %c0_i32 : i32, i32, i32
  }
}

</mosaic_0001>

<bundles_post_ra>
// kernel: tpu_custom_call.1
= control target key start
LH: loop header
LB: loop body
LE: loop exit
PB: predicated region body
PF: predicated region fallthrough
CT: control target
= control target key end

     0   :  { %s1505_s0 = inlined_call_operand.vmem [shape: bf16[2,8,32], index: 0, kind: input, shape index: {}]   ;;  %s1506_s1 = inlined_call_operand.vmem [shape: bf16[2,8,32], index: 1, kind: input, shape index: {}]   ;;  %s1507_s2 = inlined_call_operand.vmem [shape: bf16[2,8,32], index: 2, kind: input, shape index: {}]   ;;  %s1508_s3 = inlined_call_operand.vmem [shape: f32[8,8], index: 3, kind: input, shape index: {}]   ;;  %s1509_s4 = inlined_call_operand.vmem [shape: bf16[4,32,8], index: 4, kind: input, shape index: {}]   ;;  %s1510_s5 = inlined_call_operand.vmem [shape: bf16[4,32,8], index: 5, kind: input, shape index: {}]   ;;  %s1511_s6 = inlined_call_operand.vmem [shape: bf16[4,32,8], index: 6, kind: input, shape index: {}]   ;;  %s1512_s7 = inlined_call_operand.vmem [shape: bf16[4,8,32], index: 7, kind: input, shape index: {}]   ;;  %s1513_s8 = inlined_call_operand.hbm [shape: f32[2,8,32], index: 8, kind: output, shape index: {}]  }
   0x1   :  { %1518 = sst [smem:[#allocation10_spill]] %s1509_s4 }
   0x2   :  { %13 = vsyncpa [#allocation3], 0 }
   0x3   :  { %15 = vsyncpa [#allocation3 + $0x1], 0  ;;  %s1312_s27 = smov 0   ;;  %s1314_s28 = smov 0  }
   0x4   :  { %s1316_s29 = smov 0   ;;  %s1318_s30 = smov 0  }
   0x5   :  { %s1320_s9 = smov 0   ;;  %s1322_s10 = smov 0  }
   0x6   :  { %s1324_s11 = smov 0   ;;  %s1326_s12 = smov 0  }
   0x7 LB: > { %1519 = sst [smem:[#allocation5_spill]] %s1253_s10  ;;  %s989_s13 = sadd.s32 4294967295, %s1261_s12   ;;  %s1261_s12 = sphi %s1326_s12, %s21_s12   ;;  %s1257_s11 = sphi %s1324_s11, %s1532_s11   ;;  %s1253_s10 = sphi %s1322_s10, %s1531_s10   ;;  %s1249_s9 = sphi %s1320_s9, %s1530_s9   ;;  %s1245_s30 = sphi %s1318_s30, %s1529_s30   ;;  %s1241_s29 = sphi %s1316_s29, %s1535_s29   ;;  %s1237_s28 = sphi %s1314_s28, %s1534_s28   ;;  %s1233_s27 = sphi %s1312_s27, %s1533_s27  }
   0x8   : > { %1520 = sst [smem:[#allocation6_spill]] %s1257_s11  ;;  %s990_s14 = sadd.s32 4294967294, %s1261_s12  }
   0x9   : > { %s33_s15 = sadd.s32 1, %s1253_s10  ;;  %s40_s16 = sadd.s32 1, %s1257_s11 }
   0xa   : > { %p34_p0 = scmp.ge.s32.totalorder %s33_s15, 4  ;;  %p269_p1 = scmp.ne.s32.totalorder %s1241_s29, %s1237_s28 }
   0xb   : > { %p270_p2 = scmp.eq.s32.totalorder %s989_s13, 7  ;;  %p275_p4 = scmp.ne.s32.totalorder %s1237_s28, %s1233_s27 }
   0xc   : > { %s1537_s15 = smov (%p34_p0, %s33_s15), 0  ;;  %s1539_s16 = smov (!%p34_p0, %s40_s16), %s1257_s11 }
   0xd   : > { %1521 = sst [smem:[#allocation7_spill]] %s1537_s15  ;;  %p1361_p3 = por %p270_p2, %p269_p1 }
   0xe   : > { %p42_p5 = scmp.ge.s32.totalorder %s1539_s16, 2  ;;  %p276_p6 = scmp.eq.s32.totalorder %s990_s14, 7 }
   0xf   : > { %p994_p7 = scmp.ge.s32.totalorder %s1261_s12, 1  ;;  %p356_p8 = scmp.lt.s32.totalorder %s1261_s12, 9 }
  0x10   : > { %s1541_s16 = smov (%p42_p5, %s1539_s16), 0  ;;  %p1371_p9 = por %p276_p6, %p275_p4 }
  0x11   : > { %1523 = sst [smem:[#allocation8_spill]] %s1541_s16  ;;  %p357_p10 = pnand %p994_p7, %p356_p8 }
  0x12   : > { %s254_s19 = ssub.s32 %s1257_s11, %s1541_s16  ;;  %s259_s20 = sadd.s32 1, %s1241_s29  ;;  %v1263_v0 = vmov (!%p357_p10), 0.0   ;;  %vm1264_vm0 = vmmov (!%p357_p10), 0   ;;  %vm490_vm1 = vcmask (!%p357_p10), 261120   ;;  %vm648_vm2 = vcmask (!%p357_p10), 64512   ;;  %v647_v22 = vld [vmem:[%s1508_s3] sm:$0xff] (!%p357_p10) }
  0x13   : > { %p257_p11 = scmp.eq.s32.totalorder %s254_s19, 0  ;;  %360 = sbr.rel (%p357_p10) target bundleno = 1244 (0x4dc), region = 52  ;;  %1049 = vmatprep.subr.bf16.mxu1 (!%p357_p10), %v1263_v0  ;;  %1041 = vmatprep.subr.bf16.mxu0 (!%p357_p10), %v1263_v0  ;;  %vm711_vm3 = vcmask (!%p357_p10), 1043456  }
  0x14   : > { %p442_p12 = scmp.lt.s32.totalorder (!%p357_p10), %s1245_s30, 3  ;;  %s1514_s22 = sand.u32 (!%p357_p10), 1, %s1237_s28   ;;  %1053 = vmatprep.mubr.msk.bf16.mxu1 (!%p357_p10), %vm1264_vm0, %v1263_v0  ;;  %1045 = vmatprep.mubr.msk.bf16.mxu0 (!%p357_p10), %vm1264_vm0, %v1263_v0 }
  0x15   : > { %s1379_s21 = scalar_select %p257_p11, %s1241_s29, %s259_s20  }
  0x16   : > { %s1385_s23 = sshll.u32 (!%p357_p10), %s1514_s22, 3  ;;  %p423_p13 = scmp.lt.s32.totalorder (!%p357_p10), %s1249_s9, 1 }
  0x17   : > { %1525 = sst [smem:[#allocation9_spill]] %s1379_s21  ;;  %s1526_s4 = sld [smem:[#allocation10_spill]] (!%p357_p10) }
  0x18   : > { %p1018_p0 = scmp.ne.s32.totalorder (!%p357_p10), %s1245_s30, 0 }
  0x1a   : > { %s1388_s24 = scalar_select %p442_p12, %s1245_s30, 3 }
  0x1b   : > { %s424_s16 = scalar_select %p423_p13, %s1249_s9, 1 }
  0x1c   : > { %s1023_s25 = sshll.u32 %s1388_s24, 4  ;;  %v1265_v55 = vmov (!%p1018_p0), 0.0  }
  0x1d   : > { %s451_s14 = scalar_lea.vmem %s1510_s5, %s1023_s25  ;;  %s446_s22 = scalar_lea.vmem %s1526_s4, %s1023_s25 }
  0x1e   : > { %v1157_v1 = vld [vmem:[%s451_s14] sm:$0xff]   ;;  %v1159_v3 = vld [vmem:[%s451_s14 + $0x8] sm:$0xff]   ;;  %s1404_s10 = scalar_lea.vmem %s1511_s6, %s1023_s25  ;;  %s1406_s21 = sshll.u32 %s424_s16, 2 }
  0x1f   : > { %v1158_v2 = vld [vmem:[%s446_s22] sm:$0xff]   ;;  %1050 = vmatpush3.bf16.msra.mxu1 %v1157_v1  ;;  %v1160_v4 = vld [vmem:[%s446_s22 + $0x8] sm:$0xff]   ;;  %s433_s19 = scalar_lea.vmem %s1506_s1, %s1406_s21  ;;  %s429_s14 = scalar_lea.vmem %s1505_s0, %s1406_s21 }
  0x20   : > { %1051 = vmatprep.subr.bf16.mxu1 %v1263_v0  ;;  %1042 = vmatpush3.bf16.msra.mxu0 %v1158_v2  ;;  %v463_v5 = vld [vmem:[%s433_s19] sm:$0xf]  ;;  %v1162_v20 = vld [vmem:[%s1404_s10 + $0x8] sm:$0xff]   ;;  %s437_s15 = scalar_lea.vmem %s1507_s2, %s1406_s21 }
  0x21   : > { %1043 = vmatprep.subr.bf16.mxu0 %v1263_v0  ;;  %v462_v6 = vld [vmem:[%s429_s14] sm:$0xf] }
  0x22   : > { %v1161_v19 = vld [vmem:[%s1404_s10] sm:$0xff]   ;;  %s1005_s10 = sshll.u32 %s1388_s24, 2  ;;  %s422_s24 = scalar_lea.vmem [#allocation2], %s1385_s23 }
  0x23   : > { %1052 = vmatpush3.bf16.msra.mxu1 %v1159_v3  ;;  %v464_v21 = vld [vmem:[%s437_s15] sm:$0xf]  ;;  %s460_s26 = scalar_lea.vmem %s1512_s7, %s1005_s10  ;;  %806 = vst.msk [vmem:[%s422_s24] sm:$0xff] (!%p1018_p0), %vm490_vm1, %v1265_v55 }
  0x24   : > { %1044 = vmatpush3.bf16.msra.mxu0 %v1160_v4  ;;  %1065 = vmatprep.subr.bf16.mxu1 %v1263_v0  ;;  %v477_v40 = vld [vmem:[%s460_s26] sm:$0xf] }
  0x25   : > { %1057 = vmatprep.subr.bf16.mxu0 %v1263_v0  ;;  %v760_v41 = vsel %vm711_vm3, %v477_v40, 0 }
  0x26   : > { %1054 = vmatmul.mubr.msk.bf16.vlgmr.msra.gmra.mrb[0].mxu1 %vm490_vm1, %v463_v5 }
  0x27   : > { %1046 = vmatmul.mubr.msk.bf16.vlgmr.msra.gmra.mrb[0].mxu0 %vm490_vm1, %v462_v6  ;;  %1067 = vmatprep.mubr.msk.bf16.mxu1 %vm1264_vm0, %v1263_v0 }
  0x28   : > { %1061 = vmatprep.mubr.msk.bf16.mxu0 %vm1264_vm0, %v1263_v0  ;;  %1058 = vmatpush3.bf16.msra.mxu0 %v1161_v19 }
  0x29   : > { %1059 = vmatprep.subr.bf16.mxu0 %v1263_v0 }
  0x2c   : > { %1060 = vmatpush3.bf16.msra.mxu0 %v1162_v20 }
  0x2d   : > { %1071 = vmatprep.subr.bf16.mxu0 %v1263_v0 }
  0x2f   : > { %1062 = vmatmul.mubr.msk.bf16.vlgmr.msra.gmra.mrb[4].mxu0 %vm490_vm1, %v464_v21 }
  0x30   : > { %1073 = vmatprep.mubr.msk.bf16.mxu0 %vm1264_vm0, %v1263_v0 }
  0xf9   : > { %v584_v7 = vpop.f32.mrb[0].mxu1 }
  0xfa   : > { %v646_v8 = vpack.c.bf16 %v584_v7, %v584_v7  ;;  %v1055_v9 = vpop.f32.mrb[1].mxu1  ;;  %v528_v10 = vpop.f32.mrb[0].mxu0 }
  0xfb   : > { %v587_v11 = vpop.f32.mrb[2].mxu1  ;;  %v1047_v12 = vpop.f32.mrb[1].mxu0  ;;  %v534_v15 = vmul.f32 0.35355338, %v528_v10 }
  0xfc   : > { %v653_v13 = vsel %vm648_vm2, %v646_v8, 0  ;;  %v1056_v14 = vpop.f32.mrb[3].mxu1  ;;  %v531_v16 = vpop.f32.mrb[2].mxu0 }
  0xfd   : > { %1066 = vmatpush3.bf16.xpose.msra.mxu1 %v653_v13  ;;  %v1048_v17 = vpop.f32.mrb[3].mxu0  ;;  %v645_v18 = vpack.c.bf16 %v534_v15, %v534_v15 }
  0xfe   : > { %1077 = vmatprep.subr.bf16.mxu1 %v1263_v0 }
 0x102   : > { %v639_v34 = vpop.f32.mrb[4].mxu0 }
 0x103   : > { %v1063_v35 = vpop.f32.mrb[5].mxu0  ;;  %v707_v38 = vpack.c.bf16 %v639_v34, %v639_v34 }
 0x104   : > { %1068 = vmatmul.mubr.msk.bf16.vlgmr.msra.gmra.mrb[4].mxu1 %vm648_vm2, %v645_v18  ;;  %v642_v36 = vpop.f32.mrb[6].mxu0 }
 0x105   : > { %1079 = vmatprep.mubr.msk.bf16.mxu1 %vm1264_vm0, %v1263_v0  ;;  %v1064_v37 = vpop.f32.mrb[7].mxu0  ;;  %v713_v39 = vsel %vm711_vm3, %v707_v38, 0  ;;  %1078 = vmatpush3.bf16.msra.mxu1 %v760_v41 }
 0x106   : > { %1072 = vmatpush3.bf16.msra.mxu0 %v713_v39 }
 0x1d7   : > { %v689_v23 = vpop.f32.mrb[4].mxu1 }
 0x1d8   : > { %v690_v24 = vadd.f32 %v689_v23, %v647_v22  ;;  %v1069_v25 = vpop.f32.mrb[5].mxu1 }
 0x1d9   : > { %v692_v26 = vpop.f32.mrb[6].mxu1 }
 0x1da   : > { %v1070_v27 = vpop.f32.mrb[7].mxu1  ;;  %v695_v28 = vsel %vm648_vm2, %v690_v24, -inf }
 0x1db   : > { %696 = vmax.xlane.f32.xlu0 %v695_v28 }
 0x268   : > { %v697_v29 = vpop.xlane.xlu0 %696 }
 0x269   : > { %v698_v30 = vsub.f32 %v690_v24, %v697_v29 }
 0x26b   : > { %v699_v31 = vmul.f32 1.442695, %v698_v30 }
 0x26d   : > { %1163 = vpow2.f32 %v699_v31 }
 0x277   : > { %v1164_v32 = vpop.eup %1163 }
 0x278   : > { %v701_v33 = vsel %vm648_vm2, %v1164_v32, 0.0 }
 0x279   : > { %702 = vadd.xlane.f32.xlu0 %v701_v33 }
 0x306   : > { %v703_v42 = vpop.xlane.xlu0 %702 }
 0x307   : > { %1165 = vrcp.f32 %v703_v42 }
 0x311   : > { %v1166_v43 = vpop.eup %1165 }
 0x312   : > { %v705_v44 = vmul.f32 %v1166_v43, %v1164_v32 }
 0x314   : > { %v706_v45 = vpack.c.bf16 %v705_v44, %v705_v44 }
 0x316   : > { %1074 = vmatmul.mubr.msk.bf16.vlgmr.msra.gmra.mrb[8].mxu0 %vm648_vm2, %v706_v45 }
 0x3e9   : > { %v749_v46 = vpop.f32.mrb[8].mxu0 }
 0x3ea   : > { %v755_v47 = vpack.c.bf16 %v749_v46, %v749_v46  ;;  %v1075_v48 = vpop.f32.mrb[9].mxu0 }
 0x3eb   : > { %v752_v49 = vpop.f32.mrb[10].mxu0 }
 0x3ec   : > { %v1076_v50 = vpop.f32.mrb[11].mxu0  ;;  %1080 = vmatmul.mubr.msk.bf16.vlgmr.msra.gmra.mrb[8].mxu1 %vm648_vm2, %v755_v47 }
 0x4bc   : > { %805 = sbr.rel (%p1018_p0) target bundleno = 1219 (0x4c3), region = 56 }
 0x4bf   : > { %v796_v51 = vpop.f32.mrb[8].mxu1 }
 0x4c0   : > { %v1081_v52 = vpop.f32.mrb[9].mxu1 }
 0x4c1   : > { %v799_v53 = vpop.f32.mrb[10].mxu1 }
 0x4c2   : > { %v1082_v54 = vpop.f32.mrb[11].mxu1 }
 0x4c3 PF: > { %v807_v56 = vld [vmem:[%s422_s24] sm:$0xff]  ;;  %s1020_s13 = sshll.u32 %s1249_s9, 7  ;;  %s825_s4 = sshll.u32 %s422_s24, 4  ;;  %s1451_s4 = int_to_ptr.vmem [resolvable:$true] %s825_s4 }
 0x4c4   : > { %v808_v57 = vadd.f32 %v807_v56, %v796_v51  ;;  %s1449_s14 = scalar_lea.hbm %s1513_s8, %s1020_s13  ;;  %s1527_s30 = sand.u32 1, %s1237_s28  }
 0x4c5   : > { %s811_s23 = scalar_lea.sflag [#allocation3], %s1527_s30  ;;  %s1167_s11 = scalar_lea.vmem %s1451_s4, 128 }
 0x4c6   : > { %809 = vst.msk [vmem:[%s422_s24] sm:$0xff] %vm490_vm1, %v808_v57  ;;  %p1168_p1 = scmp.ne.s32.totalorder %s1451_s4, %s1167_s11  ;;  %s1266_s9 = smov [#allocation2]  }
 0x4c7   : > { %s1171_s15 = sshll.u32 %s1266_s9, 4  ;;  %s1172_s15 = int_to_ptr.vmem [resolvable:$false] %s1171_s15 }
 0x4c8   : > { %p1169_p2 = pnand %p1168_p1, %p1361_p3  ;;  %s1173_s16 = scalar_lea.vmem %s1172_s15, 256 }
 0x4c9   : > { %p1174_p5 = scmp.lt.s32.totalorder %s1451_s4, %s1172_s15  ;;  %p1175_p6 = scmp.lt.s32.totalorder %s1173_s16, %s1167_s11 }
 0x4ca   : > { %p1170_p4 = pneg %p1169_p2 }
 0x4cb   : > { %p1176_p7 = por %p1175_p6, %p1174_p5 }
 0x4cd   : > { %p1177_p8 = pnand %p1176_p7, %p1170_p4 }
 0x4cf   : > { %1180 = shalt.err (!%p1177_p8)
}
 0x4d0   : > { %s1181_s22 = scalar_lea.hbm %s1449_s14, 128  ;;  %s1185_s25 = scalar_lea.hbm %s1513_s8, 256 }
 0x4d1   : > { %p1182_p10 = scmp.ne.s32.totalorder %s1449_s14, %s1181_s22  ;;  %p1186_p13 = scmp.lt.u32.totalorder %s1449_s14, %s1513_s8 }
 0x4d2   : > { %p1187_p0 = scmp.lt.u32.totalorder %s1185_s25, %s1181_s22  ;;  %p1189_p2 = scmp.lt.u32.totalorder %s1181_s22, %s1449_s14 }
 0x4d3   : > { %p1183_p11 = pnand %p1182_p10, %p1361_p3 }
 0x4d4   : > { %p1188_p1 = por %p1187_p0, %p1186_p13 }
 0x4d5   : > { %p1184_p12 = pneg %p1183_p11 }
 0x4d6   : > { %p1190_p4 = por %p1189_p2, %p1188_p1 }
 0x4d8   : > { %p1191_p5 = pnand %p1190_p4, %p1184_p12 }
 0x4da   : > { %1194 = shalt.err (!%p1191_p5)
}
 0x4db   : > { %1083 = dma.vmem_to_hbm [thread:$0]  (%p1361_p3), %s1451_s4, 128, %s1449_s14, %s811_s23  }
 0x4dc PF: > { %p1089_p6 = scmp.ge.s32.totalorder %s1261_s12, 2  ;;  %s837_s13 = sand.u32 1, %s1233_s27  }
 0x4dd   : > { %s838_s19 = scalar_lea.sflag [#allocation3], %s837_s13 }
 0x4de   : > { %p1086_p7 = pnand %p1089_p6, %p1371_p9 }
 0x4e0   : > { %1228 = dma.done.wait (!%p1086_p7), %s838_s19, 128  }
 0x4e1   : > { %1230 = vsyncadd (!%p1086_p7), %s838_s19, 4294967168  ;;  %s21_s12 = sadd.s32 1, %s1261_s12   ;;  %s1528_s17 = sld [smem:[#allocation9_spill]] }
 0x4e2   : > { %p18_p8 = scmp.ge.s32.totalorder %s21_s12, 10   ;;  %s1529_s30 = sld [smem:[#allocation5_spill]] }
 0x4e3   : > { %s1530_s9 = sld [smem:[#allocation6_spill]]  ;;  %s1531_s10 = sld [smem:[#allocation7_spill]] }
 0x4e4   : > { %s1532_s11 = sld [smem:[#allocation8_spill]]  ;;  %s1533_s27 = smov %s1237_s28 }
 0x4e5   : > { %s1534_s28 = smov %s1241_s29  ;;  %20 = sbr.rel (!%p18_p8) target bundleno = 7 (0x7), region = 112 }
 0x4e7   : > { %s1535_s29 = smov %s1528_s17 }
 0x4ec   :  { %843 = vsyncpa [#allocation3], 1 }
 0x4ed   :  { %845 = vsyncpa [#allocation3 + $0x1], 1 }

</bundles_post_ra>
